<compile_context>
chip_gen: v7x
topology: tpu7x:2x2x1
jax: 0.10.0
libtpu: 0.0.40
codegen_flags: <defaults>
</compile_context>

<pallas_src>
import functools

import jax
import jax.numpy as jnp
from jax.experimental import pallas as pl
from jax.experimental.pallas import tpu as pltpu

D_IN = 400
D_OUT = 20
N_FUSED = 2 * D_OUT      # 40 useful output columns (mean ++ variance)
N_PAD = 128              # padded to one full lane tile -> unmasked stores
TB_MAX = 2048            # max rows per grid step (VMEM budget in header)
MIN_PALLAS_B = 256       # below this, plain XLA is as fast as the kernel


def latent_kernel(x_ref, w_ref, b_ref, o_ref):
    # One fused MXU matmul for both projections + bias add; the 128-wide
    # output slab gets unmasked full-lane stores and a dense writeback DMA.
    o_ref[...] = (
        jnp.dot(x_ref[...], w_ref[...], preferred_element_type=jnp.float32)
        + b_ref[...]
    ).astype(o_ref.dtype)


def _round_up(n, m):
    return ((n + m - 1) // m) * m


def _choose_tiling(B):
    """Balanced B tiling: >=2 (even) tiles when possible, tb multiple of 8."""
    b8 = _round_up(max(B, 8), 8)
    n_tiles = pl.cdiv(b8, TB_MAX)
    if b8 >= 16:                      # give v7x's second TensorCore work
        n_tiles = max(n_tiles, 2)
    if n_tiles > 1 and n_tiles % 2:   # even tile count -> balanced 2-TC split
        n_tiles += 1
    tb = _round_up(pl.cdiv(b8, n_tiles), 8)
    n_tiles = pl.cdiv(B, tb)          # ensure every block overlaps the array
    return tb, n_tiles


@functools.partial(jax.jit, static_argnames=("force_pallas",))
def latent_forward(x, w_mean, b_mean, w_var, b_var, *, force_pallas=False):
    """x: [B, 400]; w_*: [400, 20]; b_*: [20] -> (m, v), each [B, 20]."""
    B = x.shape[0]
    dtype = x.dtype

    # Fuse both heads.  Weights are tiny (400x40); casting them to the
    # activation dtype is negligible, and X itself is never recast or copied.
    w_fused = jnp.concatenate([w_mean, w_var], axis=1).astype(dtype)        # [400, 40]
    b_fused = jnp.concatenate([b_mean, b_var], axis=0).astype(jnp.float32)  # [40]

    if B < MIN_PALLAS_B and not force_pallas:
        # Tiny batch: pallas_call launch + grid overhead dominates; one fused
        # XLA dot is as fast and avoids the padded-slab writeback entirely.
        mv = (jnp.dot(x, w_fused, preferred_element_type=jnp.float32)
              + b_fused).astype(dtype)
        return mv[:, :D_OUT], mv[:, D_OUT:]

    # Lane-dense padded weight / bias (zero columns 40..127).
    w_pad = jnp.pad(w_fused, ((0, 0), (0, N_PAD - N_FUSED)))                # [400, 128]
    b_pad = jnp.pad(b_fused, (0, N_PAD - N_FUSED)).reshape(1, N_PAD)        # [1, 128]

    tb, n_tiles = _choose_tiling(B)

    cost = pl.CostEstimate(
        flops=2 * B * D_IN * N_FUSED,
        transcendentals=0,
        bytes_accessed=(
            x.size * x.dtype.itemsize
            + w_pad.size * w_pad.dtype.itemsize
            + b_pad.size * b_pad.dtype.itemsize
            + B * N_PAD * dtype.itemsize
        ),
    )

    out = pl.pallas_call(
        latent_kernel,
        out_shape=jax.ShapeDtypeStruct((B, N_PAD), dtype),
        grid_spec=pltpu.PrefetchScalarGridSpec(
            num_scalar_prefetch=0,
            grid=(n_tiles,),
            in_specs=[
                pl.BlockSpec((tb, D_IN), lambda i: (i, 0)),     # X: tiled over B
                pl.BlockSpec((D_IN, N_PAD), lambda i: (0, 0)),  # W: VMEM-resident
                pl.BlockSpec((1, N_PAD), lambda i: (0, 0)),     # b: VMEM-resident
            ],
            out_specs=pl.BlockSpec((tb, N_PAD), lambda i: (i, 0)),
        ),
        compiler_params=pltpu.CompilerParams(
            # Shards B tiles across the two TensorCores on v7x; harmless on
            # single-TC v5e/v6e.
            dimension_semantics=("parallel",),
        ),
        cost_estimate=cost,
    )(x, w_pad, b_pad)

    # Single narrow slice of the 128-wide slab, then split the [B, 40] result.
    mv = out[:, :N_FUSED]
    return mv[:, :D_OUT], mv[:, D_OUT:]


def init_params(key, d_in=D_IN, d_out=D_OUT, dtype=jnp.float32):
    # Mimics PyTorch nn.Linear default init: U(-1/sqrt(in), 1/sqrt(in)).
    k1, k2, k3, k4 = jax.random.split(key, 4)
    bound = 1.0 / jnp.sqrt(d_in)
    w_mean = jax.random.uniform(k1, (d_in, d_out), dtype, -bound, bound)
    b_mean = jax.random.uniform(k2, (d_out,), dtype, -bound, bound)
    w_var = jax.random.uniform(k3, (d_in, d_out), dtype, -bound, bound)
    b_var = jax.random.uniform(k4, (d_out,), dtype, -bound, bound)
    return w_mean, b_mean, w_var, b_var


if __name__ == "__main__":
    key = jax.random.PRNGKey(0)
    k_x1, k_x2, k_p = jax.random.split(key, 3)

    w_mean, b_mean, w_var, b_var = init_params(k_p)

    # 1) Pallas path.  B=300 is ragged (not a multiple of 8 or of the tile),
    #    exercising the partial-last-block read-pad / write-clip behavior.
    B = 300
    x = jax.random.normal(k_x1, (B, D_IN), dtype=jnp.float32)
    m, v = latent_forward(x, w_mean, b_mean, w_var, b_var)
    jax.block_until_ready((m, v))

    m_ref = x @ w_mean + b_mean
    v_ref = x @ w_var + b_var
    assert m.shape == (B, D_OUT) and v.shape == (B, D_OUT)
    assert jnp.allclose(m, m_ref, atol=5e-4, rtol=5e-4)
    assert jnp.allclose(v, v_ref, atol=5e-4, rtol=5e-4)

    # 2) Tiny-batch fast path (fused XLA dot, no Pallas launch).
    B2 = 8
    x2 = jax.random.normal(k_x2, (B2, D_IN), dtype=jnp.float32)
    m2, v2 = latent_forward(x2, w_mean, b_mean, w_var, b_var)
    jax.block_until_ready((m2, v2))
    assert jnp.allclose(m2, x2 @ w_mean + b_mean, atol=5e-4, rtol=5e-4)
    assert jnp.allclose(v2, x2 @ w_var + b_var, atol=5e-4, rtol=5e-4)

    print("KERNEL_OK")
</pallas_src>

<mosaic_0001>
module attributes {stable_mosaic.version = 11 : i64} {
  func.func @latent_kernel(%arg0: i32, %arg1: memref<152x400xf32, #tpu.memory_space<vmem>>, %arg2: memref<400x128xf32, #tpu.memory_space<vmem>>, %arg3: memref<1x128xf32, #tpu.memory_space<vmem>>, %arg4: memref<152x128xf32, #tpu.memory_space<vmem>>) attributes {dimension_semantics = [#tpu.dimension_semantics<parallel>], iteration_bounds = array<i64: 2>, scalar_prefetch = 0 : i64, scratch_operands = 0 : i64, tpu.core_type = #tpu.core_type<tc>, window_params = [{transform_indices = @transform_0, window_bounds = array<i64: 152, 400>}, {pipeline_mode = #tpu.pipeline_mode<synchronous>, transform_indices = @transform_1, window_bounds = array<i64: 400, 128>}, {pipeline_mode = #tpu.pipeline_mode<synchronous>, transform_indices = @transform_2, window_bounds = array<i64: 1, 128>}, {transform_indices = @transform_3, window_bounds = array<i64: 152, 128>}]} {
    %c0 = arith.constant 0 : index
    %c0_0 = arith.constant 0 : index
    %0 = vector.load %arg1[%c0, %c0_0] : memref<152x400xf32, #tpu.memory_space<vmem>>, vector<152x400xf32>
    %c0_1 = arith.constant 0 : index
    %c0_2 = arith.constant 0 : index
    %1 = vector.load %arg2[%c0_1, %c0_2] : memref<400x128xf32, #tpu.memory_space<vmem>>, vector<400x128xf32>
    %cst = arith.constant dense<0.000000e+00> : vector<152x128xf32>
    %2 = tpu.matmul %0, %1, %cst {dimension_numbers = #tpu.dot_dimension_numbers<[1], [0], [0], [1], [0, 0, 1, 1], [], []>} : vector<152x400xf32>, vector<400x128xf32>, vector<152x128xf32> -> vector<152x128xf32>
    %c0_3 = arith.constant 0 : index
    %c0_4 = arith.constant 0 : index
    %3 = vector.load %arg3[%c0_3, %c0_4] : memref<1x128xf32, #tpu.memory_space<vmem>>, vector<1x128xf32>
    %4 = vector.broadcast %3 : vector<1x128xf32> to vector<152x128xf32>
    %5 = arith.addf %2, %4 : vector<152x128xf32>
    %c0_5 = arith.constant 0 : index
    %c0_6 = arith.constant 0 : index
    %6 = vector.load %arg4[%c0_5, %c0_6] : memref<152x128xf32, #tpu.memory_space<vmem>>, vector<152x128xf32>
    tpu.vector_store %arg4[%c0_5, %c0_6], %5 {strides = array<i32>} : memref<152x128xf32, #tpu.memory_space<vmem>>, vector<152x128xf32>,
    return
  }
  func.func @transform_0(%arg0: i32) -> (i32, i32) {
    %c0_i32 = arith.constant 0 : i32
    %c0_i32_0 = arith.constant 0 : i32
    return %arg0, %c0_i32 : i32, i32
  }
  func.func @transform_1(%arg0: i32) -> (i32, i32) {
    %c0_i32 = arith.constant 0 : i32
    %c0_i32_0 = arith.constant 0 : i32
    %c0_i32_1 = arith.constant 0 : i32
    return %c0_i32, %c0_i32_0 : i32, i32
  }
  func.func @transform_2(%arg0: i32) -> (i32, i32) {
    %c0_i32 = arith.constant 0 : i32
    %c0_i32_0 = arith.constant 0 : i32
    %c0_i32_1 = arith.constant 0 : i32
    return %c0_i32, %c0_i32_0 : i32, i32
  }
  func.func @transform_3(%arg0: i32) -> (i32, i32) {
    %c0_i32 = arith.constant 0 : i32
    %c0_i32_0 = arith.constant 0 : i32
    return %arg0, %c0_i32 : i32, i32
  }
}

</mosaic_0001>

<bundles_post_ra>
// kernel: latent_forward.1
= control target key start
LH: loop header
LB: loop body
LE: loop exit
PB: predicated region body
PF: predicated region fallthrough
CT: control target
= control target key end

     0   :  { %s945_s12 = smov 0   ;;  %s1283_s0 = inlined_call_operand.vmem [shape: f32[300,400], index: 0, kind: input, shape index: {}]   ;;  %s1284_s1 = inlined_call_operand.vmem [shape: f32[400,128], index: 1, kind: input, shape index: {}]   ;;  %s1285_s2 = inlined_call_operand.vmem [shape: f32[1,128], index: 2, kind: input, shape index: {}]   ;;  %s1286_s3 = inlined_call_operand.vmem [shape: f32[300,128], index: 3, kind: output, shape index: {}]  }
   0x1 LB: > { %s763_s13 = sadd.s32 4294967295, %s922_s12   ;;  %p767_p0 = scmp.ge.s32.totalorder %s922_s12, 1  ;;  %s922_s12 = sphi %s945_s12, %s13_s12  }
   0x2   : > { %p139_p1 = scmp.lt.s32.totalorder %s922_s12, 3 }
   0x4   : > { %p140_p2 = pnand %p767_p0, %p139_p1 }
   0x5   : > { %v253_v0 = vld [vmem:[%s1284_s1] sm:$0xff] (!%p140_p2)  ;;  %v254_v1 = vld [vmem:[%s1284_s1 + $0x8] sm:$0xff] (!%p140_p2)  ;;  %v255_v2 = vld [vmem:[%s1284_s1 + $0x10] sm:$0xff] (!%p140_p2)  ;;  %s164_s20 = smul.u32 (!%p140_p2), 19, %s763_s13  ;;  %v924_v3 = vmov (!%p140_p2), 0.0|0.0   ;;  %vm310_vm0 = vcmask (!%p140_p2), 130048  }
   0x6   : > { %143 = sbr.rel (%p140_p2) target bundleno = 360 (0x168), region = 32  ;;  %794 = vmatprep.subr.bf16.mxu1 (!%p140_p2), %v924_v3  ;;  %v795_v4 = vpack.c.bf16 (!%p140_p2), %v254_v1, %v253_v0  ;;  %v256_v5 = vld [vmem:[%s1284_s1 + $0x18] sm:$0xff] (!%p140_p2)  ;;  %842 = vmatprep.subr.bf16.mxu0 (!%p140_p2), %v924_v3  ;;  %v257_v7 = vld [vmem:[%s1284_s1 + $0x20] sm:$0xff] (!%p140_p2)  ;;  %v258_v8 = vld [vmem:[%s1284_s1 + $0x28] sm:$0xff] (!%p140_p2) }
   0x7   : > { %p165_p3 = scmp.lt.s32.totalorder (!%p140_p2), %s164_s20, 37  ;;  %v798_v6 = vpack.c.bf16 (!%p140_p2), %v256_v5, %v255_v2  ;;  %v285_v9 = vld [vmem:[%s1284_s1 + $0x100] sm:$0xff] (!%p140_p2)  ;;  %v286_v10 = vld [vmem:[%s1284_s1 + $0x108] sm:$0xff] (!%p140_p2)  ;;  %v287_v12 = vld [vmem:[%s1284_s1 + $0x110] sm:$0xff] (!%p140_p2)  ;;  %v801_v13 = vpack.c.bf16 (!%p140_p2), %v258_v8, %v257_v7 }
   0x8   : > { %796 = vmatpush1.bf16.msra.mxu1 (!%p140_p2), %v795_v4  ;;  %v843_v11 = vpack.c.bf16 (!%p140_p2), %v286_v10, %v285_v9  ;;  %v288_v14 = vld [vmem:[%s1284_s1 + $0x118] sm:$0xff] (!%p140_p2)  ;;  %v259_v15 = vld [vmem:[%s1284_s1 + $0x30] sm:$0xff] (!%p140_p2)  ;;  %v289_v18 = vld [vmem:[%s1284_s1 + $0x120] sm:$0xff] (!%p140_p2) }
   0x9   : > { %797 = vmatprep.subr.bf16.mxu1 (!%p140_p2), %v924_v3  ;;  %v260_v16 = vld [vmem:[%s1284_s1 + $0x38] sm:$0xff] (!%p140_p2)  ;;  %v846_v17 = vpack.c.bf16 (!%p140_p2), %v288_v14, %v287_v12  ;;  %v290_v19 = vld [vmem:[%s1284_s1 + $0x128] sm:$0xff] (!%p140_p2)  ;;  %v261_v21 = vld [vmem:[%s1284_s1 + $0x40] sm:$0xff] (!%p140_p2) }
   0xa   : > { %844 = vmatpush1.bf16.msra.mxu0 (!%p140_p2), %v843_v11  ;;  %v804_v20 = vpack.c.bf16 (!%p140_p2), %v260_v16, %v259_v15  ;;  %v262_v22 = vld [vmem:[%s1284_s1 + $0x48] sm:$0xff] (!%p140_p2)  ;;  %v849_v23 = vpack.c.bf16 (!%p140_p2), %v290_v19, %v289_v18  ;;  %v291_v24 = vld [vmem:[%s1284_s1 + $0x130] sm:$0xff] (!%p140_p2)  ;;  %v292_v25 = vld [vmem:[%s1284_s1 + $0x138] sm:$0xff] (!%p140_p2) }
   0xb   : > { %845 = vmatprep.subr.bf16.mxu0 (!%p140_p2), %v924_v3  ;;  %v807_v26 = vpack.c.bf16 (!%p140_p2), %v262_v22, %v261_v21  ;;  %v263_v27 = vld [vmem:[%s1284_s1 + $0x50] sm:$0xff] (!%p140_p2)  ;;  %v264_v28 = vld [vmem:[%s1284_s1 + $0x58] sm:$0xff] (!%p140_p2)  ;;  %v852_v29 = vpack.c.bf16 (!%p140_p2), %v292_v25, %v291_v24  ;;  %v293_v31 = vld [vmem:[%s1284_s1 + $0x140] sm:$0xff] (!%p140_p2) }
   0xc   : > { %799 = vmatpush1.bf16.msra.mxu1 (!%p140_p2), %v798_v6  ;;  %v294_v32 = vld [vmem:[%s1284_s1 + $0x148] sm:$0xff] (!%p140_p2)  ;;  %v810_v34 = vpack.c.bf16 (!%p140_p2), %v264_v28, %v263_v27  ;;  %v265_v35 = vld [vmem:[%s1284_s1 + $0x60] sm:$0xff] (!%p140_p2)  ;;  %v295_v38 = vld [vmem:[%s1284_s1 + $0x150] sm:$0xff] (!%p140_p2) }
   0xd   : > { %s1288_s20 = smov (!%p165_p3, %s164_s20), 37  ;;  %800 = vmatprep.subr.bf16.mxu1 %v924_v3  ;;  %v266_v36 = vld [vmem:[%s1284_s1 + $0x68] sm:$0xff]  ;;  %v855_v37 = vpack.c.bf16 %v294_v32, %v293_v31  ;;  %v296_v39 = vld [vmem:[%s1284_s1 + $0x158] sm:$0xff]  ;;  %v267_v41 = vld [vmem:[%s1284_s1 + $0x70] sm:$0xff] }
   0xe   : > { %s793_s17 = sshll.u32 %s1288_s20, 5  ;;  %847 = vmatpush1.bf16.msra.mxu0 %v846_v17  ;;  %v813_v40 = vpack.c.bf16 %v266_v36, %v265_v35  ;;  %v268_v42 = vld [vmem:[%s1284_s1 + $0x78] sm:$0xff]  ;;  %v858_v43 = vpack.c.bf16 %v296_v39, %v295_v38  ;;  %v297_v44 = vld [vmem:[%s1284_s1 + $0x160] sm:$0xff]  ;;  %v298_v45 = vld [vmem:[%s1284_s1 + $0x168] sm:$0xff]  ;;  %s770_s23 = sshll.u32 %s1288_s20, 3 }
   0xf   : > { %848 = vmatprep.subr.bf16.mxu0 %v924_v3  ;;  %s1020_s29 = scalar_lea.vmem %s1283_s0, %s793_s17  ;;  %v816_v46 = vpack.c.bf16 %v268_v42, %v267_v41  ;;  %v269_v47 = vld [vmem:[%s1284_s1 + $0x80] sm:$0xff]  ;;  %v270_v48 = vld [vmem:[%s1284_s1 + $0x88] sm:$0xff]  ;;  %v861_v49 = vpack.c.bf16 %v298_v45, %v297_v44  ;;  %v299_v50 = vld [vmem:[%s1284_s1 + $0x170] sm:$0xff]  ;;  %s1241_s25 = scalar_lea.vmem %s1286_s3, %s770_s23 }
  0x10   : > { %802 = vmatpush1.bf16.msra.mxu1 %v801_v13  ;;  %v178_v30 = vld [vmem:[%s1020_s29 + $0x8] sm:$0xff]  ;;  %v180_v33 = vld [vmem:[%s1020_s29 + $0x18] sm:$0xff]  ;;  %v819_v52 = vpack.c.bf16 %v270_v48, %v269_v47  ;;  %v271_v53 = vld [vmem:[%s1284_s1 + $0x90] sm:$0xff] }
  0x11   : > { %803 = vmatprep.subr.bf16.mxu1 %v924_v3  ;;  %432 = vmatprep.mubr.f32.mxu1 %v178_v30  ;;  %v300_v51 = vld [vmem:[%s1284_s1 + $0x178] sm:$0xff]  ;;  %v301_v56 = vld [vmem:[%s1284_s1 + $0x180] sm:$0xff]  ;;  %v302_v57 = vld [vmem:[%s1284_s1 + $0x188] sm:$0xff] }
  0x12   : > { %850 = vmatpush1.bf16.msra.mxu0 %v849_v23  ;;  %772 = vmatprep.mubr.msk.f32.mxu0 %vm310_vm0, %v180_v33  ;;  %v272_v54 = vld [vmem:[%s1284_s1 + $0x98] sm:$0xff]  ;;  %v864_v55 = vpack.c.bf16 %v300_v51, %v299_v50  ;;  %v273_v59 = vld [vmem:[%s1284_s1 + $0xa0] sm:$0xff]  ;;  %v274_v60 = vld [vmem:[%s1284_s1 + $0xa8] sm:$0xff]  ;;  %v867_v61 = vpack.c.bf16 %v302_v57, %v301_v56 }
  0x13   : > { %851 = vmatprep.subr.bf16.mxu0 %v924_v3  ;;  %v822_v58 = vpack.c.bf16 %v272_v54, %v271_v53  ;;  %v825_v62 = vpack.c.bf16 %v274_v60, %v273_v59  ;;  %v275_v63 = vld [vmem:[%s1284_s1 + $0xb0] sm:$0xff]  ;;  %v276_v0 = vld [vmem:[%s1284_s1 + $0xb8] sm:$0xff]  ;;  %v277_v5 = vld [vmem:[%s1284_s1 + $0xc0] sm:$0xff] }
  0x14   : > { %805 = vmatpush1.bf16.msra.mxu1 %v804_v20  ;;  %v179_v1 = vld [vmem:[%s1020_s29 + $0x10] sm:$0xff]  ;;  %v184_v2 = vld [vmem:[%s1020_s29 + $0x38] sm:$0xff]  ;;  %v828_v4 = vpack.c.bf16 %v276_v0, %v275_v63  ;;  %v278_v6 = vld [vmem:[%s1284_s1 + $0xc8] sm:$0xff] }
  0x15   : > { %806 = vmatprep.subr.bf16.mxu1 %v924_v3  ;;  %v183_v7 = vld [vmem:[%s1020_s29 + $0x30] sm:$0xff]  ;;  %v188_v8 = vld [vmem:[%s1020_s29 + $0x58] sm:$0xff]  ;;  %v831_v9 = vpack.c.bf16 %v278_v6, %v277_v5  ;;  %v281_v15 = vld [vmem:[%s1284_s1 + $0xe0] sm:$0xff] }
  0x16   : > { %853 = vmatpush1.bf16.msra.mxu0 %v852_v29  ;;  %v279_v10 = vld [vmem:[%s1284_s1 + $0xd0] sm:$0xff]  ;;  %v280_v11 = vld [vmem:[%s1284_s1 + $0xd8] sm:$0xff]  ;;  %v282_v16 = vld [vmem:[%s1284_s1 + $0xe8] sm:$0xff] }
  0x17   : > { %854 = vmatprep.subr.bf16.mxu0 %v924_v3  ;;  %v187_v12 = vld [vmem:[%s1020_s29 + $0x50] sm:$0xff]  ;;  %v192_v13 = vld [vmem:[%s1020_s29 + $0x78] sm:$0xff]  ;;  %v834_v14 = vpack.c.bf16 %v280_v11, %v279_v10  ;;  %v837_v19 = vpack.c.bf16 %v282_v16, %v281_v15  ;;  %v177_v27 = vld [vmem:[%s1020_s29] sm:$0xff] }
  0x18   : > { %808 = vmatpush1.bf16.msra.mxu1 %v807_v26  ;;  %v191_v17 = vld [vmem:[%s1020_s29 + $0x70] sm:$0xff]  ;;  %v196_v18 = vld [vmem:[%s1020_s29 + $0x98] sm:$0xff]  ;;  %v182_v28 = vld [vmem:[%s1020_s29 + $0x28] sm:$0xff] }
  0x19   : > { %809 = vmatprep.subr.bf16.mxu1 %v924_v3  ;;  %v283_v20 = vld [vmem:[%s1284_s1 + $0xf0] sm:$0xff]  ;;  %v284_v21 = vld [vmem:[%s1284_s1 + $0xf8] sm:$0xff]  ;;  %v186_v31 = vld [vmem:[%s1020_s29 + $0x48] sm:$0xff] }
  0x1a   : > { %856 = vmatpush1.bf16.msra.mxu0 %v855_v37  ;;  %v195_v22 = vld [vmem:[%s1020_s29 + $0x90] sm:$0xff]  ;;  %v200_v23 = vld [vmem:[%s1020_s29 + $0xb8] sm:$0xff]  ;;  %v840_v24 = vpack.c.bf16 %v284_v21, %v283_v20  ;;  %v190_v35 = vld [vmem:[%s1020_s29 + $0x68] sm:$0xff] }
  0x1b   : > { %857 = vmatprep.subr.bf16.mxu0 %v924_v3  ;;  %v199_v25 = vld [vmem:[%s1020_s29 + $0xb0] sm:$0xff]  ;;  %v204_v26 = vld [vmem:[%s1020_s29 + $0xd8] sm:$0xff]  ;;  %v189_v38 = vld [vmem:[%s1020_s29 + $0x60] sm:$0xff] }
  0x1c   : > { %811 = vmatpush1.bf16.msra.mxu1 %v810_v34  ;;  %v203_v29 = vld [vmem:[%s1020_s29 + $0xd0] sm:$0xff]  ;;  %v208_v30 = vld [vmem:[%s1020_s29 + $0xf8] sm:$0xff]  ;;  %v185_v34 = vld [vmem:[%s1020_s29 + $0x40] sm:$0xff] }
  0x1d   : > { %812 = vmatprep.subr.bf16.mxu1 %v924_v3  ;;  %v207_v32 = vld [vmem:[%s1020_s29 + $0xf0] sm:$0xff]  ;;  %v212_v33 = vld [vmem:[%s1020_s29 + $0x118] sm:$0xff]  ;;  %v194_v39 = vld [vmem:[%s1020_s29 + $0x88] sm:$0xff] }
  0x1e   : > { %859 = vmatpush1.bf16.msra.mxu0 %v858_v43  ;;  %v211_v36 = vld [vmem:[%s1020_s29 + $0x110] sm:$0xff]  ;;  %v216_v37 = vld [vmem:[%s1020_s29 + $0x138] sm:$0xff]  ;;  %v193_v42 = vld [vmem:[%s1020_s29 + $0x80] sm:$0xff] }
  0x1f   : > { %860 = vmatprep.subr.bf16.mxu0 %v924_v3  ;;  %v220_v41 = vld [vmem:[%s1020_s29 + $0x158] sm:$0xff]  ;;  %v198_v43 = vld [vmem:[%s1020_s29 + $0xa8] sm:$0xff]  ;;  %v219_v44 = vld [vmem:[%s1020_s29 + $0x150] sm:$0xff] }
  0x20   : > { %814 = vmatpush1.bf16.msra.mxu1 %v813_v40  ;;  %v215_v40 = vld [vmem:[%s1020_s29 + $0x130] sm:$0xff]  ;;  %v224_v45 = vld [vmem:[%s1020_s29 + $0x178] sm:$0xff]  ;;  %v202_v47 = vld [vmem:[%s1020_s29 + $0xc8] sm:$0xff] }
  0x21   : > { %815 = vmatprep.subr.bf16.mxu1 %v924_v3  ;;  %v223_v48 = vld [vmem:[%s1020_s29 + $0x170] sm:$0xff]  ;;  %v201_v50 = vld [vmem:[%s1020_s29 + $0xc0] sm:$0xff]  ;;  %v206_v51 = vld [vmem:[%s1020_s29 + $0xe8] sm:$0xff] }
  0x22   : > { %862 = vmatpush1.bf16.msra.mxu0 %v861_v49  ;;  %v228_v49 = vld [vmem:[%s1020_s29 + $0x198] sm:$0xff]  ;;  %v205_v54 = vld [vmem:[%s1020_s29 + $0xe0] sm:$0xff]  ;;  %v231_v56 = vld [vmem:[%s1020_s29 + $0x1b0] sm:$0xff] }
  0x23   : > { %863 = vmatprep.subr.bf16.mxu0 %v924_v3  ;;  %v232_v53 = vld [vmem:[%s1020_s29 + $0x1b8] sm:$0xff]  ;;  %v214_v59 = vld [vmem:[%s1020_s29 + $0x128] sm:$0xff]  ;;  %v235_v60 = vld [vmem:[%s1020_s29 + $0x1d0] sm:$0xff] }
  0x24   : > { %817 = vmatpush1.bf16.msra.mxu1 %v816_v46  ;;  %v197_v46 = vld [vmem:[%s1020_s29 + $0xa0] sm:$0xff]  ;;  %v236_v57 = vld [vmem:[%s1020_s29 + $0x1d8] sm:$0xff]  ;;  %v218_v63 = vld [vmem:[%s1020_s29 + $0x148] sm:$0xff] }
  0x25   : > { %818 = vmatprep.subr.bf16.mxu1 %v924_v3  ;;  %v239_v0 = vld [vmem:[%s1020_s29 + $0x1f0] sm:$0xff]  ;;  %v248_v6 = vld [vmem:[%s1020_s29 + $0x238] sm:$0xff]  ;;  %v225_v11 = vld [vmem:[%s1020_s29 + $0x180] sm:$0xff] }
  0x26   : > { %865 = vmatpush1.bf16.msra.mxu0 %v864_v55  ;;  %v210_v55 = vld [vmem:[%s1020_s29 + $0x108] sm:$0xff]  ;;  %v243_v5 = vld [vmem:[%s1020_s29 + $0x210] sm:$0xff]  ;;  %v252_v10 = vld [vmem:[%s1020_s29 + $0x258] sm:$0xff] }
  0x27   : > { %866 = vmatprep.subr.bf16.mxu0 %v924_v3  ;;  %v234_v15 = vld [vmem:[%s1020_s29 + $0x1c8] sm:$0xff]  ;;  %v233_v16 = vld [vmem:[%s1020_s29 + $0x1c0] sm:$0xff] }
  0x28   : > { %820 = vmatpush1.bf16.msra.mxu1 %v819_v52  ;;  %v227_v52 = vld [vmem:[%s1020_s29 + $0x190] sm:$0xff]  ;;  %v241_v20 = vld [vmem:[%s1020_s29 + $0x200] sm:$0xff]  ;;  %v246_v21 = vld [vmem:[%s1020_s29 + $0x228] sm:$0xff] }
  0x29   : > { %821 = vmatprep.subr.bf16.mxu1 %v924_v3 }
  0x2a   : > { %868 = vmatpush1.bf16.msra.mxu0 %v867_v61  ;;  %v240_v61 = vld [vmem:[%s1020_s29 + $0x1f8] sm:$0xff] }
  0x2c   : > { %823 = vmatpush1.bf16.msra.mxu1 %v822_v58  ;;  %v209_v58 = vld [vmem:[%s1020_s29 + $0x100] sm:$0xff] }
  0x2d   : > { %824 = vmatprep.subr.bf16.mxu1 %v924_v3  ;;  %593 = vmatmul.mubr.f32.vlgmr.msra.gmra.mrb[0].mxu0 %v179_v1  ;;  %v244_v1 = vld [vmem:[%s1020_s29 + $0x218] sm:$0xff] }
  0x2e   : > { %773 = vmatprep.mubr.msk.f32.mxu0 %vm310_vm0, %v184_v2  ;;  %v217_v2 = vld [vmem:[%s1020_s29 + $0x140] sm:$0xff] }
  0x30   : > { %826 = vmatpush1.bf16.msra.mxu1 %v825_v62  ;;  %v213_v62 = vld [vmem:[%s1020_s29 + $0x120] sm:$0xff] }
  0x31   : > { %827 = vmatprep.subr.bf16.mxu1 %v924_v3  ;;  %598 = vmatmul.mubr.f32.gmra.mrb[2].mxu0 %v183_v7  ;;  %v221_v7 = vld [vmem:[%s1020_s29 + $0x160] sm:$0xff] }
  0x32   : > { %774 = vmatprep.mubr.msk.f32.mxu0 %vm310_vm0, %v188_v8  ;;  %v226_v8 = vld [vmem:[%s1020_s29 + $0x188] sm:$0xff] }
  0x34   : > { %829 = vmatpush1.bf16.msra.mxu1 %v828_v4  ;;  %v222_v4 = vld [vmem:[%s1020_s29 + $0x168] sm:$0xff] }
  0x35   : > { %830 = vmatprep.subr.bf16.mxu1 %v924_v3  ;;  %603 = vmatmul.mubr.f32.gmra.mrb[4].mxu0 %v187_v12  ;;  %v230_v12 = vld [vmem:[%s1020_s29 + $0x1a8] sm:$0xff] }
  0x36   : > { %775 = vmatprep.mubr.msk.f32.mxu0 %vm310_vm0, %v192_v13  ;;  %v251_v13 = vld [vmem:[%s1020_s29 + $0x250] sm:$0xff] }
  0x38   : > { %832 = vmatpush1.bf16.msra.mxu1 %v831_v9  ;;  %v247_v9 = vld [vmem:[%s1020_s29 + $0x230] sm:$0xff] }
  0x39   : > { %833 = vmatprep.subr.bf16.mxu1 %v924_v3  ;;  %608 = vmatmul.mubr.f32.gmra.mrb[6].mxu0 %v191_v17  ;;  %v238_v17 = vld [vmem:[%s1020_s29 + $0x1e8] sm:$0xff] }
  0x3a   : > { %776 = vmatprep.mubr.msk.f32.mxu0 %vm310_vm0, %v196_v18  ;;  %v237_v18 = vld [vmem:[%s1020_s29 + $0x1e0] sm:$0xff] }
  0x3c   : > { %835 = vmatpush1.bf16.msra.mxu1 %v834_v14  ;;  %v229_v14 = vld [vmem:[%s1020_s29 + $0x1a0] sm:$0xff] }
  0x3d   : > { %836 = vmatprep.subr.bf16.mxu1 %v924_v3  ;;  %613 = vmatmul.mubr.f32.gmra.mrb[8].mxu0 %v195_v22  ;;  %v245_v22 = vld [vmem:[%s1020_s29 + $0x220] sm:$0xff] }
  0x3e   : > { %777 = vmatprep.mubr.msk.f32.mxu0 %vm310_vm0, %v200_v23  ;;  %v250_v23 = vld [vmem:[%s1020_s29 + $0x248] sm:$0xff] }
  0x40   : > { %838 = vmatpush1.bf16.msra.mxu1 %v837_v19  ;;  %v242_v19 = vld [vmem:[%s1020_s29 + $0x208] sm:$0xff] }
  0x41   : > { %839 = vmatprep.subr.bf16.mxu1 %v924_v3  ;;  %618 = vmatmul.mubr.f32.gmra.mrb[10].mxu0 %v199_v25  ;;  %v181_v3 = vld [vmem:[%s1020_s29 + $0x20] sm:$0xff] }
  0x42   : > { %778 = vmatprep.mubr.msk.f32.mxu0 %vm310_vm0, %v204_v26 }
  0x44   : > { %841 = vmatpush1.bf16.msra.mxu1 %v840_v24  ;;  %v249_v24 = vld [vmem:[%s1020_s29 + $0x240] sm:$0xff] }
  0x45   : > { %623 = vmatmul.mubr.f32.gmra.mrb[12].mxu0 %v203_v29 }
  0x46   : > { %779 = vmatprep.mubr.msk.f32.mxu0 %vm310_vm0, %v208_v30 }
  0x47   : > { %433 = vmatmul.mubr.f32.vlgmr.msra.gmra.mrb[0].mxu1 %v177_v27 }
  0x48   : > { %437 = vmatprep.mubr.f32.mxu1 %v182_v28 }
  0x49   : > { %628 = vmatmul.mubr.f32.gmra.mrb[14].mxu0 %v207_v32 }
  0x4a   : > { %780 = vmatprep.mubr.msk.f32.mxu0 %vm310_vm0, %v212_v33 }
  0x4b   : > { %438 = vmatmul.mubr.f32.gmra.mrb[2].mxu1 %v181_v3 }
  0x4c   : > { %442 = vmatprep.mubr.f32.mxu1 %v186_v31 }
  0x4d   : > { %633 = vmatmul.mubr.f32.gmra.mrb[16].mxu0 %v211_v36 }
  0x4e   : > { %781 = vmatprep.mubr.msk.f32.mxu0 %vm310_vm0, %v216_v37 }
  0x4f   : > { %443 = vmatmul.mubr.f32.gmra.mrb[4].mxu1 %v185_v34 }
  0x50   : > { %447 = vmatprep.mubr.f32.mxu1 %v190_v35  ;;  %v1234_v35 = vld [vmem:[%s1285_s2] ss:$0 sm:$0xff] }
  0x51   : > { %638 = vmatmul.mubr.f32.gmra.mrb[18].mxu0 %v215_v40 }
  0x52   : > { %782 = vmatprep.mubr.msk.f32.mxu0 %vm310_vm0, %v220_v41 }
  0x53   : > { %448 = vmatmul.mubr.f32.gmra.mrb[6].mxu1 %v189_v38 }
  0x54   : > { %452 = vmatprep.mubr.f32.mxu1 %v194_v39 }
  0x55   : > { %643 = vmatmul.mubr.f32.gmra.mrb[20].mxu0 %v219_v44 }
  0x56   : > { %783 = vmatprep.mubr.msk.f32.mxu0 %vm310_vm0, %v224_v45 }
  0x57   : > { %453 = vmatmul.mubr.f32.gmra.mrb[8].mxu1 %v193_v42 }
  0x58   : > { %457 = vmatprep.mubr.f32.mxu1 %v198_v43 }
  0x59   : > { %648 = vmatmul.mubr.f32.gmra.mrb[22].mxu0 %v223_v48 }
  0x5a   : > { %784 = vmatprep.mubr.msk.f32.mxu0 %vm310_vm0, %v228_v49 }
  0x5b   : > { %458 = vmatmul.mubr.f32.gmra.mrb[10].mxu1 %v197_v46 }
  0x5c   : > { %462 = vmatprep.mubr.f32.mxu1 %v202_v47 }
  0x5d   : > { %653 = vmatmul.mubr.f32.gmra.mrb[24].mxu0 %v227_v52 }
  0x5e   : > { %785 = vmatprep.mubr.msk.f32.mxu0 %vm310_vm0, %v232_v53 }
  0x5f   : > { %463 = vmatmul.mubr.f32.gmra.mrb[12].mxu1 %v201_v50 }
  0x60   : > { %467 = vmatprep.mubr.f32.mxu1 %v206_v51 }
  0x61   : > { %658 = vmatmul.mubr.f32.gmra.mrb[26].mxu0 %v231_v56 }
  0x62   : > { %786 = vmatprep.mubr.msk.f32.mxu0 %vm310_vm0, %v236_v57 }
  0x63   : > { %468 = vmatmul.mubr.f32.gmra.mrb[14].mxu1 %v205_v54 }
  0x64   : > { %472 = vmatprep.mubr.f32.mxu1 %v210_v55 }
  0x65   : > { %663 = vmatmul.mubr.f32.gmra.mrb[28].mxu0 %v235_v60 }
  0x66   : > { %787 = vmatprep.mubr.msk.f32.mxu0 %vm310_vm0, %v240_v61 }
  0x67   : > { %473 = vmatmul.mubr.f32.gmra.mrb[16].mxu1 %v209_v58 }
  0x68   : > { %477 = vmatprep.mubr.f32.mxu1 %v214_v59 }
  0x69   : > { %668 = vmatmul.mubr.f32.gmra.mrb[30].mxu0 %v239_v0 }
  0x6a   : > { %788 = vmatprep.mubr.msk.f32.mxu0 %vm310_vm0, %v244_v1 }
  0x6b   : > { %478 = vmatmul.mubr.f32.gmra.mrb[18].mxu1 %v213_v62 }
  0x6c   : > { %482 = vmatprep.mubr.f32.mxu1 %v218_v63 }
  0x6d   : > { %673 = vmatmul.mubr.f32.gmra.mrb[32].mxu0 %v243_v5 }
  0x6e   : > { %789 = vmatprep.mubr.msk.f32.mxu0 %vm310_vm0, %v248_v6 }
  0x6f   : > { %483 = vmatmul.mubr.f32.gmra.mrb[20].mxu1 %v217_v2 }
  0x70   : > { %487 = vmatprep.mubr.f32.mxu1 %v222_v4 }
  0x71   : > { %678 = vmatmul.mubr.f32.gmra.mrb[34].mxu0 %v247_v9 }
  0x72   : > { %790 = vmatprep.mubr.msk.f32.mxu0 %vm310_vm0, %v252_v10 }
  0x73   : > { %488 = vmatmul.mubr.f32.gmra.mrb[22].mxu1 %v221_v7 }
  0x74   : > { %492 = vmatprep.mubr.f32.mxu1 %v226_v8 }
  0x75   : > { %683 = vmatmul.mubr.f32.gmra.mrb[36].mxu0 %v251_v13 }
  0x77   : > { %493 = vmatmul.mubr.f32.gmra.mrb[24].mxu1 %v225_v11 }
  0x78   : > { %497 = vmatprep.mubr.f32.mxu1 %v230_v12 }
  0x7b   : > { %498 = vmatmul.mubr.f32.gmra.mrb[26].mxu1 %v229_v14 }
  0x7c   : > { %502 = vmatprep.mubr.f32.mxu1 %v234_v15 }
  0x7f   : > { %503 = vmatmul.mubr.f32.gmra.mrb[28].mxu1 %v233_v16 }
  0x80   : > { %507 = vmatprep.mubr.f32.mxu1 %v238_v17 }
  0x83   : > { %508 = vmatmul.mubr.f32.gmra.mrb[30].mxu1 %v237_v18 }
  0x84   : > { %512 = vmatprep.mubr.f32.mxu1 %v242_v19 }
  0x87   : > { %513 = vmatmul.mubr.f32.gmra.mrb[32].mxu1 %v241_v20 }
  0x88   : > { %517 = vmatprep.mubr.f32.mxu1 %v246_v21 }
  0x8b   : > { %518 = vmatmul.mubr.f32.gmra.mrb[34].mxu1 %v245_v22 }
  0x8c   : > { %522 = vmatprep.mubr.f32.mxu1 %v250_v23 }
  0x8f   : > { %523 = vmatmul.mubr.f32.gmra.mrb[36].mxu1 %v249_v24 }
 0x100   : > { %v594_v25 = vpop.f32.mrb[0].mxu0 }
 0x101   : > { %v596_v26 = vpop.f32.mrb[1].mxu0 }
 0x104   : > { %v599_v27 = vpop.f32.mrb[2].mxu0 }
 0x105   : > { %v601_v28 = vpop.f32.mrb[3].mxu0 }
 0x108   : > { %v604_v29 = vpop.f32.mrb[4].mxu0 }
 0x109   : > { %v606_v30 = vpop.f32.mrb[5].mxu0 }
 0x10c   : > { %v609_v3 = vpop.f32.mrb[6].mxu0 }
 0x10d   : > { %v611_v31 = vpop.f32.mrb[7].mxu0 }
 0x110   : > { %v614_v32 = vpop.f32.mrb[8].mxu0 }
 0x111   : > { %v616_v33 = vpop.f32.mrb[9].mxu0 }
 0x114   : > { %v619_v34 = vpop.f32.mrb[10].mxu0 }
 0x115   : > { %v621_v36 = vpop.f32.mrb[11].mxu0 }
 0x118   : > { %v624_v40 = vpop.f32.mrb[12].mxu0 }
 0x119   : > { %v626_v41 = vpop.f32.mrb[13].mxu0 }
 0x11a   : > { %v434_v37 = vpop.f32.mrb[0].mxu1 }
 0x11b   : > { %v435_v38 = vadd.f32 %v1234_v35, %v434_v37  ;;  %v436_v39 = vpop.f32.mrb[1].mxu1 }
 0x11c   : > { %v629_v46 = vpop.f32.mrb[14].mxu0 }
 0x11d   : > { %v595_v42 = vadd.f32 %v594_v25, %v435_v38  ;;  %v631_v47 = vpop.f32.mrb[15].mxu0 }
 0x11e   : > { %v439_v43 = vpop.f32.mrb[2].mxu1 }
 0x11f   : > { %688 = vst [vmem:[%s1241_s25] sm:$0xff] %v595_v42  ;;  %v440_v44 = vadd.f32 %v1234_v35, %v439_v43  ;;  %v441_v45 = vpop.f32.mrb[3].mxu1 }
 0x120   : > { %v634_v52 = vpop.f32.mrb[16].mxu0 }
 0x121   : > { %v600_v48 = vadd.f32 %v599_v27, %v440_v44  ;;  %v636_v53 = vpop.f32.mrb[17].mxu0 }
 0x122   : > { %v444_v49 = vpop.f32.mrb[4].mxu1 }
 0x123   : > { %689 = vst [vmem:[%s1241_s25 + $0x8] sm:$0xff] %v600_v48  ;;  %v445_v50 = vadd.f32 %v1234_v35, %v444_v49  ;;  %v446_v51 = vpop.f32.mrb[5].mxu1 }
 0x124   : > { %v639_v58 = vpop.f32.mrb[18].mxu0 }
 0x125   : > { %v605_v54 = vadd.f32 %v604_v29, %v445_v50  ;;  %v641_v59 = vpop.f32.mrb[19].mxu0 }
 0x126   : > { %v449_v55 = vpop.f32.mrb[6].mxu1 }
 0x127   : > { %690 = vst [vmem:[%s1241_s25 + $0x10] sm:$0xff] %v605_v54  ;;  %v450_v56 = vadd.f32 %v1234_v35, %v449_v55  ;;  %v451_v57 = vpop.f32.mrb[7].mxu1 }
 0x128   : > { %v644_v0 = vpop.f32.mrb[20].mxu0 }
 0x129   : > { %v610_v60 = vadd.f32 %v609_v3, %v450_v56  ;;  %v646_v1 = vpop.f32.mrb[21].mxu0 }
 0x12a   : > { %v454_v61 = vpop.f32.mrb[8].mxu1 }
 0x12b   : > { %691 = vst [vmem:[%s1241_s25 + $0x18] sm:$0xff] %v610_v60  ;;  %v455_v62 = vadd.f32 %v1234_v35, %v454_v61  ;;  %v456_v63 = vpop.f32.mrb[9].mxu1 }
 0x12c   : > { %v649_v7 = vpop.f32.mrb[22].mxu0 }
 0x12d   : > { %v615_v2 = vadd.f32 %v614_v32, %v455_v62  ;;  %v651_v8 = vpop.f32.mrb[23].mxu0 }
 0x12e   : > { %v459_v4 = vpop.f32.mrb[10].mxu1 }
 0x12f   : > { %692 = vst [vmem:[%s1241_s25 + $0x20] sm:$0xff] %v615_v2  ;;  %v460_v5 = vadd.f32 %v1234_v35, %v459_v4  ;;  %v461_v6 = vpop.f32.mrb[11].mxu1 }
 0x130   : > { %v654_v13 = vpop.f32.mrb[24].mxu0 }
 0x131   : > { %v620_v9 = vadd.f32 %v619_v34, %v460_v5  ;;  %v656_v14 = vpop.f32.mrb[25].mxu0 }
 0x132   : > { %v464_v10 = vpop.f32.mrb[12].mxu1 }
 0x133   : > { %693 = vst [vmem:[%s1241_s25 + $0x28] sm:$0xff] %v620_v9  ;;  %v465_v11 = vadd.f32 %v1234_v35, %v464_v10  ;;  %v466_v12 = vpop.f32.mrb[13].mxu1 }
 0x134   : > { %v659_v19 = vpop.f32.mrb[26].mxu0 }
 0x135   : > { %v625_v15 = vadd.f32 %v624_v40, %v465_v11  ;;  %v661_v20 = vpop.f32.mrb[27].mxu0 }
 0x136   : > { %v469_v16 = vpop.f32.mrb[14].mxu1 }
 0x137   : > { %694 = vst [vmem:[%s1241_s25 + $0x30] sm:$0xff] %v625_v15  ;;  %v470_v17 = vadd.f32 %v1234_v35, %v469_v16  ;;  %v471_v18 = vpop.f32.mrb[15].mxu1 }
 0x138   : > { %v664_v25 = vpop.f32.mrb[28].mxu0 }
 0x139   : > { %v630_v21 = vadd.f32 %v629_v46, %v470_v17  ;;  %v666_v26 = vpop.f32.mrb[29].mxu0 }
 0x13a   : > { %v474_v22 = vpop.f32.mrb[16].mxu1 }
 0x13b   : > { %695 = vst [vmem:[%s1241_s25 + $0x38] sm:$0xff] %v630_v21  ;;  %v475_v23 = vadd.f32 %v1234_v35, %v474_v22  ;;  %v476_v24 = vpop.f32.mrb[17].mxu1 }
 0x13c   : > { %v669_v3 = vpop.f32.mrb[30].mxu0 }
 0x13d   : > { %v635_v27 = vadd.f32 %v634_v52, %v475_v23  ;;  %v671_v31 = vpop.f32.mrb[31].mxu0 }
 0x13e   : > { %v479_v28 = vpop.f32.mrb[18].mxu1 }
 0x13f   : > { %696 = vst [vmem:[%s1241_s25 + $0x40] sm:$0xff] %v635_v27  ;;  %v480_v29 = vadd.f32 %v1234_v35, %v479_v28  ;;  %v481_v30 = vpop.f32.mrb[19].mxu1 }
 0x140   : > { %v674_v37 = vpop.f32.mrb[32].mxu0 }
 0x141   : > { %v640_v32 = vadd.f32 %v639_v58, %v480_v29  ;;  %v676_v38 = vpop.f32.mrb[33].mxu0 }
 0x142   : > { %v484_v33 = vpop.f32.mrb[20].mxu1 }
 0x143   : > { %697 = vst [vmem:[%s1241_s25 + $0x48] sm:$0xff] %v640_v32  ;;  %v485_v34 = vadd.f32 %v1234_v35, %v484_v33  ;;  %v486_v36 = vpop.f32.mrb[21].mxu1 }
 0x144   : > { %v679_v43 = vpop.f32.mrb[34].mxu0 }
 0x145   : > { %v645_v39 = vadd.f32 %v644_v0, %v485_v34  ;;  %v681_v44 = vpop.f32.mrb[35].mxu0 }
 0x146   : > { %v489_v40 = vpop.f32.mrb[22].mxu1 }
 0x147   : > { %698 = vst [vmem:[%s1241_s25 + $0x50] sm:$0xff] %v645_v39  ;;  %v490_v41 = vadd.f32 %v1234_v35, %v489_v40  ;;  %v491_v42 = vpop.f32.mrb[23].mxu1 }
 0x148   : > { %v684_v49 = vpop.f32.mrb[36].mxu0 }
 0x149   : > { %v650_v45 = vadd.f32 %v649_v7, %v490_v41  ;;  %v686_v50 = vpop.f32.mrb[37].mxu0 }
 0x14a   : > { %v494_v46 = vpop.f32.mrb[24].mxu1 }
 0x14b   : > { %699 = vst [vmem:[%s1241_s25 + $0x58] sm:$0xff] %v650_v45  ;;  %v495_v47 = vadd.f32 %v1234_v35, %v494_v46  ;;  %v496_v48 = vpop.f32.mrb[25].mxu1 }
 0x14d   : > { %v655_v51 = vadd.f32 %v654_v13, %v495_v47 }
 0x14e   : > { %v499_v52 = vpop.f32.mrb[26].mxu1 }
 0x14f   : > { %700 = vst [vmem:[%s1241_s25 + $0x60] sm:$0xff] %v655_v51  ;;  %v500_v53 = vadd.f32 %v1234_v35, %v499_v52  ;;  %v501_v54 = vpop.f32.mrb[27].mxu1 }
 0x151   : > { %v660_v55 = vadd.f32 %v659_v19, %v500_v53 }
 0x152   : > { %v504_v56 = vpop.f32.mrb[28].mxu1 }
 0x153   : > { %701 = vst [vmem:[%s1241_s25 + $0x68] sm:$0xff] %v660_v55  ;;  %v505_v57 = vadd.f32 %v1234_v35, %v504_v56  ;;  %v506_v58 = vpop.f32.mrb[29].mxu1 }
 0x155   : > { %v665_v59 = vadd.f32 %v664_v25, %v505_v57 }
 0x156   : > { %v509_v60 = vpop.f32.mrb[30].mxu1 }
 0x157   : > { %702 = vst [vmem:[%s1241_s25 + $0x70] sm:$0xff] %v665_v59  ;;  %v510_v61 = vadd.f32 %v1234_v35, %v509_v60  ;;  %v511_v62 = vpop.f32.mrb[31].mxu1 }
 0x159   : > { %v670_v63 = vadd.f32 %v669_v3, %v510_v61 }
 0x15a   : > { %v514_v0 = vpop.f32.mrb[32].mxu1 }
 0x15b   : > { %703 = vst [vmem:[%s1241_s25 + $0x78] sm:$0xff] %v670_v63  ;;  %v515_v1 = vadd.f32 %v1234_v35, %v514_v0  ;;  %v516_v2 = vpop.f32.mrb[33].mxu1 }
 0x15d   : > { %v675_v4 = vadd.f32 %v674_v37, %v515_v1 }
 0x15e   : > { %v519_v5 = vpop.f32.mrb[34].mxu1 }
 0x15f   : > { %704 = vst [vmem:[%s1241_s25 + $0x80] sm:$0xff] %v675_v4  ;;  %v520_v6 = vadd.f32 %v1234_v35, %v519_v5  ;;  %v521_v7 = vpop.f32.mrb[35].mxu1 }
 0x161   : > { %v680_v8 = vadd.f32 %v679_v43, %v520_v6 }
 0x162   : > { %v524_v9 = vpop.f32.mrb[36].mxu1 }
 0x163   : > { %705 = vst [vmem:[%s1241_s25 + $0x88] sm:$0xff] %v680_v8  ;;  %v525_v10 = vadd.f32 %v1234_v35, %v524_v9  ;;  %v526_v11 = vpop.f32.mrb[37].mxu1 }
 0x165   : > { %v685_v12 = vadd.f32 %v684_v49, %v525_v10 }
 0x167   : > { %706 = vst [vmem:[%s1241_s25 + $0x90] sm:$0xff] %v685_v12 }
 0x168 PF: > { %s13_s12 = sadd.s32 1, %s922_s12  }
 0x169   : > { %p10_p4 = scmp.ge.s32.totalorder %s13_s12, 4  }
 0x16b   :  { %12 = sbr.rel (!%p10_p4) target bundleno = 1 (0x1), region = 62 }

</bundles_post_ra>
